<compile_context>
chip_gen: v7x
topology: tpu7x:2x2x1
jax: 0.10.0
libtpu: 0.0.40
codegen_flags: <defaults>
</compile_context>

<pallas_src>
import jax
import jax.numpy as jnp
from jax import lax
from jax.experimental import pallas as pl
from jax.experimental.pallas import tpu as pltpu


# ----------------------------- constants -----------------------------------

CIN = 64          # Mixed_3a hard-codes 64 input channels
COUT = 96         # conv branch output channels
COUT_PAD = 128    # lane-dense padded Cout
KSIZE = 3
STRIDE = 2
KK = KSIZE * KSIZE
TM_MAX = 512      # M tile (rows of the im2col matrix) -- fits VMEM on v5e/v6e/v7x


def _round_up(x, m):
    return ((x + m - 1) // m) * m


# ----------------------------- Pallas kernel --------------------------------

def _mixed3a_kernel(tap_ref, w_ref, b_ref, pool_ref, conv_ref, acc_ref, mx_ref):
    """Fused Mixed_3a tile.

    tap_ref : (1, TM, CIN)      bf16   current tap slab (tile of rows)
    w_ref   : (1, CIN, COUT_PAD) bf16  folded conv+BN weight slice for this tap
    b_ref   : (1, COUT_PAD)     f32    folded bias
    pool_ref: (TM, CIN)         f32    maxpool branch output tile
    conv_ref: (TM, COUT_PAD)    f32    conv branch output tile (padded lanes)
    acc_ref : (TM, COUT_PAD)    f32    VMEM matmul accumulator
    mx_ref  : (TM, CIN)         f32    VMEM running max
    """
    t = pl.program_id(1)

    a = tap_ref[0]                                   # (TM, CIN) bf16

    @pl.when(t == 0)
    def _init():
        acc_ref[...] = jnp.zeros_like(acc_ref)
        mx_ref[...] = jnp.full_like(mx_ref, -jnp.inf)

    # conv branch: MXU matmul on bf16 operands, f32 accumulation.
    acc_ref[...] += jnp.dot(a, w_ref[0], preferred_element_type=jnp.float32)

    # pool branch: running max over the same tap stream (VPU).
    mx_ref[...] = jnp.maximum(mx_ref[...], a.astype(jnp.float32))

    @pl.when(t == pl.num_programs(1) - 1)
    def _finalize():
        conv_ref[...] = jnp.maximum(acc_ref[...] + b_ref[...], 0.0).astype(
            conv_ref.dtype)
        pool_ref[...] = mx_ref[...].astype(pool_ref.dtype)


# ------------------------------ JAX glue ------------------------------------

def _build_taps(x_nhwc):
    """Return (KK, M, CIN) tap slabs of the 3x3/stride-2 window, M = N*OH*OW."""
    n, h, w, c = x_nhwc.shape
    oh = (h - KSIZE) // STRIDE + 1
    ow = (w - KSIZE) // STRIDE + 1
    taps = []
    for kh in range(KSIZE):
        for kw in range(KSIZE):
            t = lax.slice(
                x_nhwc,
                (0, kh, kw, 0),
                (n, kh + (oh - 1) * STRIDE + 1, kw + (ow - 1) * STRIDE + 1, c),
                (1, STRIDE, STRIDE, 1))
            taps.append(t.reshape(n * oh * ow, c))
    return jnp.stack(taps, axis=0), oh, ow


def mixed_3a_forward(x_nchw, params):
    """Mixed_3a forward. x_nchw: (N, 64, H, W) -> (N, 160, OH, OW)."""
    w9 = params["w"]          # (KK, CIN, COUT_PAD) bf16, BN folded, zero-padded
    bias = params["b"]        # (1, COUT_PAD) f32

    x = jnp.transpose(x_nchw, (0, 2, 3, 1)).astype(jnp.float32)   # NHWC
    n = x.shape[0]

    taps, oh, ow = _build_taps(x)                  # (KK, M, CIN) f32
    m = n * oh * ow

    # Pad M to a multiple of 8 (sublane) and of the tile size.
    m8 = _round_up(m, 8)
    tm = min(TM_MAX, m8)
    m_pad = _round_up(m8, tm)
    taps = jnp.pad(taps, ((0, 0), (0, m_pad - m), (0, 0))).astype(jnp.bfloat16)

    grid = (m_pad // tm, KK)

    cost = pl.CostEstimate(
        flops=2 * m_pad * CIN * COUT_PAD * KK,
        transcendentals=0,
        bytes_accessed=(taps.size * 2 + w9.size * 2 + bias.size * 4
                        + m_pad * CIN * 4 + m_pad * COUT_PAD * 4),
    )

    pool, conv = pl.pallas_call(
        _mixed3a_kernel,
        out_shape=(jax.ShapeDtypeStruct((m_pad, CIN), jnp.float32),
                   jax.ShapeDtypeStruct((m_pad, COUT_PAD), jnp.float32)),
        grid_spec=pltpu.PrefetchScalarGridSpec(
            num_scalar_prefetch=0,
            grid=grid,
            in_specs=[
                pl.BlockSpec((1, tm, CIN), lambda i, t: (t, i, 0)),
                pl.BlockSpec((1, CIN, COUT_PAD), lambda i, t: (t, 0, 0)),
                pl.BlockSpec((1, COUT_PAD), lambda i, t: (0, 0)),
            ],
            out_specs=[
                pl.BlockSpec((tm, CIN), lambda i, t: (i, 0)),
                pl.BlockSpec((tm, COUT_PAD), lambda i, t: (i, 0)),
            ],
            scratch_shapes=[
                pltpu.VMEM((tm, COUT_PAD), jnp.float32),
                pltpu.VMEM((tm, CIN), jnp.float32),
            ]),
        compiler_params=pltpu.CompilerParams(
            dimension_semantics=("parallel", "arbitrary")),
        cost_estimate=cost,
    )(taps, w9, bias)

    pool = pool[:m].reshape(n, oh, ow, CIN)
    conv = conv[:m, :COUT].reshape(n, oh, ow, COUT)
    out = jnp.concatenate([pool, conv], axis=-1)    # channels: 64 + 96 = 160
    return jnp.transpose(out, (0, 3, 1, 2))         # back to NCHW


# --------------------------- parameter building -----------------------------

def make_mixed_3a_params(key, eps=1e-3):
    """Deterministic Conv2d(64->96, 3x3, s2) weight + BN params, folded + padded."""
    k1, k2, k3, k4, k5 = jax.random.split(key, 5)
    fan_in = CIN * KSIZE * KSIZE
    w_oihw = jax.random.normal(k1, (COUT, CIN, KSIZE, KSIZE),
                               jnp.float32) * (1.0 / jnp.sqrt(fan_in))
    gamma = jax.random.uniform(k2, (COUT,), jnp.float32, 0.8, 1.2)
    beta = jax.random.normal(k3, (COUT,), jnp.float32) * 0.1
    running_mean = jax.random.normal(k4, (COUT,), jnp.float32) * 0.1
    running_var = jax.random.uniform(k5, (COUT,), jnp.float32, 0.5, 1.5)

    scale = gamma / jnp.sqrt(running_var + eps)
    w_folded = w_oihw * scale[:, None, None, None]
    bias = beta - running_mean * scale

    # (Cout,Cin,KH,KW) -> (KH,KW,Cin,Cout) -> (KK, Cin, Cout); tap index = kh*3+kw
    w_hwio = jnp.transpose(w_folded, (2, 3, 1, 0)).reshape(KK, CIN, COUT)
    # Pad Cout 96 -> 128 for a lane-dense MXU N dim / unmasked stores.
    w9 = jnp.pad(w_hwio, ((0, 0), (0, 0), (0, COUT_PAD - COUT))).astype(jnp.bfloat16)
    b = jnp.pad(bias, (0, COUT_PAD - COUT)).reshape(1, COUT_PAD).astype(jnp.float32)
    return {"w": w9, "b": b}


# ---------------------------------- main -------------------------------------

if __name__ == "__main__":
    key = jax.random.PRNGKey(0)
    kx, kp = jax.random.split(key)

    # Mixed_3a hard-codes 64 input channels; small spatial dims (16x16), batch 2.
    x = jax.random.normal(kx, (2, 64, 16, 16), jnp.float32)   # NCHW
    params = make_mixed_3a_params(kp)

    out = jax.jit(mixed_3a_forward)(x, params)
    out = jax.block_until_ready(out)

    expected_shape = (2, 64 + 96, 7, 7)   # (2, 160, 7, 7)
    assert out.shape == expected_shape, out.shape
    assert out.dtype == jnp.float32
    assert bool(jnp.all(jnp.isfinite(out)))
    print("KERNEL_OK")
</pallas_src>

<mosaic_0001>
module attributes {stable_mosaic.version = 11 : i64} {
  func.func @_mixed3a_kernel(%arg0: i32, %arg1: i32, %arg2: memref<1x104x64xbf16, #tpu.memory_space<vmem>>, %arg3: memref<1x64x128xbf16, #tpu.memory_space<vmem>>, %arg4: memref<1x128xf32, #tpu.memory_space<vmem>>, %arg5: memref<104x64xf32, #tpu.memory_space<vmem>>, %arg6: memref<104x128xf32, #tpu.memory_space<vmem>>, %arg7: memref<104x128xf32, #tpu.memory_space<vmem>>, %arg8: memref<104x64xf32, #tpu.memory_space<vmem>>) attributes {dimension_semantics = [#tpu.dimension_semantics<parallel>, #tpu.dimension_semantics<arbitrary>], iteration_bounds = array<i64: 1, 9>, scalar_prefetch = 0 : i64, scratch_operands = 2 : i64, tpu.core_type = #tpu.core_type<tc>, window_params = [{transform_indices = @transform_0, window_bounds = array<i64: 1, 104, 64>}, {transform_indices = @transform_1, window_bounds = array<i64: 1, 64, 128>}, {pipeline_mode = #tpu.pipeline_mode<synchronous>, transform_indices = @transform_2, window_bounds = array<i64: 1, 128>}, {transform_indices = @transform_3, window_bounds = array<i64: 104, 64>}, {transform_indices = @transform_4, window_bounds = array<i64: 104, 128>}]} {
    %c0 = arith.constant 0 : index
    %c0_0 = arith.constant 0 : index
    %c0_1 = arith.constant 0 : index
    %0 = vector.load %arg2[%c0, %c0_0, %c0_1] : memref<1x104x64xbf16, #tpu.memory_space<vmem>>, vector<1x104x64xbf16>
    %1 = vector.shape_cast %0 : vector<1x104x64xbf16> to vector<104x64xbf16>
    %c0_i32 = arith.constant 0 : i32
    %2 = arith.cmpi eq, %arg1, %c0_i32 : i32
    %3 = arith.extui %2 : i1 to i32
    %c0_i32_2 = arith.constant 0 : i32
    %4 = arith.cmpi ne, %3, %c0_i32_2 : i32
    scf.if %4 {
      %cst_15 = arith.constant 0.000000e+00 : f32
      %18 = vector.broadcast %cst_15 : f32 to vector<104x128xf32>
      %c0_16 = arith.constant 0 : index
      %c0_17 = arith.constant 0 : index
      %19 = vector.load %arg7[%c0_16, %c0_17] : memref<104x128xf32, #tpu.memory_space<vmem>>, vector<104x128xf32>
      tpu.vector_store %arg7[%c0_16, %c0_17], %18 {strides = array<i32>} : memref<104x128xf32, #tpu.memory_space<vmem>>, vector<104x128xf32>,
      %cst_18 = arith.constant 0xFF800000 : f32
      %20 = vector.broadcast %cst_18 : f32 to vector<104x64xf32>
      %c0_19 = arith.constant 0 : index
      %c0_20 = arith.constant 0 : index
      %21 = vector.load %arg8[%c0_19, %c0_20] : memref<104x64xf32, #tpu.memory_space<vmem>>, vector<104x64xf32>
      tpu.vector_store %arg8[%c0_19, %c0_20], %20 {strides = array<i32>} : memref<104x64xf32, #tpu.memory_space<vmem>>, vector<104x64xf32>,
    } else {
    }
    %c0_3 = arith.constant 0 : index
    %c0_4 = arith.constant 0 : index
    %5 = vector.load %arg7[%c0_3, %c0_4] : memref<104x128xf32, #tpu.memory_space<vmem>>, vector<104x128xf32>
    %c0_5 = arith.constant 0 : index
    %c0_6 = arith.constant 0 : index
    %c0_7 = arith.constant 0 : index
    %6 = vector.load %arg3[%c0_5, %c0_6, %c0_7] : memref<1x64x128xbf16, #tpu.memory_space<vmem>>, vector<1x64x128xbf16>
    %7 = vector.shape_cast %6 : vector<1x64x128xbf16> to vector<64x128xbf16>
    %cst = arith.constant dense<0.000000e+00> : vector<104x128xf32>
    %8 = tpu.matmul %1, %7, %cst {dimension_numbers = #tpu.dot_dimension_numbers<[1], [0], [0], [1], [0, 0, 1, 1], [], []>} : vector<104x64xbf16>, vector<64x128xbf16>, vector<104x128xf32> -> vector<104x128xf32>
    %9 = arith.addf %5, %8 : vector<104x128xf32>
    %c0_8 = arith.constant 0 : index
    %c0_9 = arith.constant 0 : index
    %10 = vector.load %arg7[%c0_8, %c0_9] : memref<104x128xf32, #tpu.memory_space<vmem>>, vector<104x128xf32>
    tpu.vector_store %arg7[%c0_8, %c0_9], %9 {strides = array<i32>} : memref<104x128xf32, #tpu.memory_space<vmem>>, vector<104x128xf32>,
    %c0_10 = arith.constant 0 : index
    %c0_11 = arith.constant 0 : index
    %11 = vector.load %arg8[%c0_10, %c0_11] : memref<104x64xf32, #tpu.memory_space<vmem>>, vector<104x64xf32>
    %12 = arith.extf %1 : vector<104x64xbf16> to vector<104x64xf32>
    %13 = arith.maximumf %11, %12 : vector<104x64xf32>
    %c0_12 = arith.constant 0 : index
    %c0_13 = arith.constant 0 : index
    %14 = vector.load %arg8[%c0_12, %c0_13] : memref<104x64xf32, #tpu.memory_space<vmem>>, vector<104x64xf32>
    tpu.vector_store %arg8[%c0_12, %c0_13], %13 {strides = array<i32>} : memref<104x64xf32, #tpu.memory_space<vmem>>, vector<104x64xf32>,
    %c8_i32 = arith.constant 8 : i32
    %15 = arith.cmpi eq, %arg1, %c8_i32 : i32
    %16 = arith.extui %15 : i1 to i32
    %c0_i32_14 = arith.constant 0 : i32
    %17 = arith.cmpi ne, %16, %c0_i32_14 : i32
    scf.if %17 {
      %c0_15 = arith.constant 0 : index
      %c0_16 = arith.constant 0 : index
      %18 = vector.load %arg7[%c0_15, %c0_16] : memref<104x128xf32, #tpu.memory_space<vmem>>, vector<104x128xf32>
      %c0_17 = arith.constant 0 : index
      %c0_18 = arith.constant 0 : index
      %19 = vector.load %arg4[%c0_17, %c0_18] : memref<1x128xf32, #tpu.memory_space<vmem>>, vector<1x128xf32>
      %20 = vector.broadcast %19 : vector<1x128xf32> to vector<104x128xf32>
      %21 = arith.addf %18, %20 : vector<104x128xf32>
      %cst_19 = arith.constant 0.000000e+00 : f32
      %22 = vector.broadcast %cst_19 : f32 to vector<104x128xf32>
      %23 = arith.maximumf %21, %22 : vector<104x128xf32>
      %c0_20 = arith.constant 0 : index
      %c0_21 = arith.constant 0 : index
      %24 = vector.load %arg6[%c0_20, %c0_21] : memref<104x128xf32, #tpu.memory_space<vmem>>, vector<104x128xf32>
      tpu.vector_store %arg6[%c0_20, %c0_21], %23 {strides = array<i32>} : memref<104x128xf32, #tpu.memory_space<vmem>>, vector<104x128xf32>,
      %c0_22 = arith.constant 0 : index
      %c0_23 = arith.constant 0 : index
      %25 = vector.load %arg8[%c0_22, %c0_23] : memref<104x64xf32, #tpu.memory_space<vmem>>, vector<104x64xf32>
      %c0_24 = arith.constant 0 : index
      %c0_25 = arith.constant 0 : index
      %26 = vector.load %arg5[%c0_24, %c0_25] : memref<104x64xf32, #tpu.memory_space<vmem>>, vector<104x64xf32>
      tpu.vector_store %arg5[%c0_24, %c0_25], %25 {strides = array<i32>} : memref<104x64xf32, #tpu.memory_space<vmem>>, vector<104x64xf32>,
    } else {
    }
    return
  }
  func.func @transform_0(%arg0: i32, %arg1: i32) -> (i32, i32, i32) {
    %c0_i32 = arith.constant 0 : i32
    %c0_i32_0 = arith.constant 0 : i32
    return %arg1, %arg0, %c0_i32 : i32, i32, i32
  }
  func.func @transform_1(%arg0: i32, %arg1: i32) -> (i32, i32, i32) {
    %c0_i32 = arith.constant 0 : i32
    %c0_i32_0 = arith.constant 0 : i32
    %c0_i32_1 = arith.constant 0 : i32
    return %arg1, %c0_i32, %c0_i32_0 : i32, i32, i32
  }
  func.func @transform_2(%arg0: i32, %arg1: i32) -> (i32, i32) {
    %c0_i32 = arith.constant 0 : i32
    %c0_i32_0 = arith.constant 0 : i32
    %c0_i32_1 = arith.constant 0 : i32
    return %c0_i32, %c0_i32_0 : i32, i32
  }
  func.func @transform_3(%arg0: i32, %arg1: i32) -> (i32, i32) {
    %c0_i32 = arith.constant 0 : i32
    %c0_i32_0 = arith.constant 0 : i32
    return %arg0, %c0_i32 : i32, i32
  }
  func.func @transform_4(%arg0: i32, %arg1: i32) -> (i32, i32) {
    %c0_i32 = arith.constant 0 : i32
    %c0_i32_0 = arith.constant 0 : i32
    return %arg0, %c0_i32 : i32, i32
  }
}

</mosaic_0001>

<bundles_post_ra>
// kernel: mixed_3a_forward.1
= control target key start
LH: loop header
LB: loop body
LE: loop exit
PB: predicated region body
PF: predicated region fallthrough
CT: control target
= control target key end

     0   :  { %s948_s15 = smov 0   ;;  %s950_s16 = smov 0   ;;  %s1195_s0 = inlined_call_operand.vmem [shape: bf16[9,104,64], index: 0, kind: input, shape index: {}]   ;;  %s1196_s1 = inlined_call_operand.vmem [shape: bf16[9,64,128], index: 1, kind: input, shape index: {}]   ;;  %s1197_s2 = inlined_call_operand.vmem [shape: f32[1,128], index: 2, kind: input, shape index: {}]   ;;  %s1198_s3 = inlined_call_operand.vmem [shape: f32[104,64], index: 3, kind: output, shape index: {0}]   ;;  %s1199_s4 = inlined_call_operand.vmem [shape: f32[104,128], index: 4, kind: output, shape index: {1}]  }
   0x1   :  { %s952_s17 = smov 0  }
   0x2 LB: > { %s24_s18 = sadd.s32 1, %s913_s16  ;;  %p775_p0 = scmp.ge.s32.totalorder %s917_s17, 1  ;;  %s917_s17 = sphi %s952_s17, %s15_s17   ;;  %s913_s16 = sphi %s950_s16, %s1201_s16   ;;  %s909_s15 = sphi %s948_s15, %s1200_s15  }
   0x3   : > { %p25_p1 = scmp.ge.s32.totalorder %s24_s18, 9  ;;  %p194_p2 = scmp.lt.s32.totalorder %s917_s17, 10 }
   0x5   : > { %s1203_s18 = smov (%p25_p1, %s24_s18), 0  ;;  %p195_p3 = pnand %p775_p0, %p194_p2 }
   0x6   : > { %p235_p4 = scmp.lt.s32.totalorder (!%p195_p3), %s909_s15, 8  ;;  %p779_p5 = scmp.ne.s32.totalorder (!%p195_p3), %s909_s15, 0 }
   0x7   : > { %198 = sbr.rel (%p195_p3) target bundleno = 303 (0x12f), region = 32 }
   0xe   : > { %s236_s19 = scalar_select %p235_p4, %s909_s15, 8 }
   0xf   : > { %vm292_vm0 = vcmask (!%p779_p5), 523264   ;;  %v919_v13 = vmov (!%p779_p5), 0.0   ;;  %v920_v14 = vmov (!%p779_p5), -inf  }
  0x10   : > { %s862_s20 = smul.u32 52, %s236_s19  ;;  %s806_s21 = sshll.u32 %s236_s19, 5  ;;  %279 = vst [vmem:[#allocation2] sm:$0xff] (!%p779_p5), %v919_v13  ;;  %280 = vst [vmem:[#allocation2 + $0x8] sm:$0xff] (!%p779_p5), %v919_v13 }
  0x11   : > { %s973_s24 = scalar_lea.vmem %s1196_s1, %s806_s21  ;;  %278 = sbr.rel (%p779_p5) target bundleno = 33 (0x21), region = 36  ;;  %281 = vst [vmem:[#allocation2 + $0x10] sm:$0xff] (!%p779_p5), %v919_v13  ;;  %282 = vst [vmem:[#allocation2 + $0x18] sm:$0xff] (!%p779_p5), %v919_v13 }
  0x12   : > { %s242_s27 = scalar_lea.vmem %s1195_s0, %s862_s20  ;;  %283 = vst [vmem:[#allocation2 + $0x20] sm:$0xff] (!%p779_p5), %v919_v13  ;;  %284 = vst [vmem:[#allocation2 + $0x28] sm:$0xff] (!%p779_p5), %v919_v13 }
  0x13   : > { %v978_v0 = vld [vmem:[%s242_s27] sm:$0xf]  ;;  %v980_v1 = vld [vmem:[%s242_s27 + $0x4] sm:$0xf]  ;;  %v982_v2 = vld [vmem:[%s242_s27 + $0x8] sm:$0xf] }
  0x14   : > { %v984_v3 = vld [vmem:[%s242_s27 + $0xc] sm:$0xf]  ;;  %v986_v4 = vld [vmem:[%s242_s27 + $0x10] sm:$0xf]  ;;  %v988_v5 = vld [vmem:[%s242_s27 + $0x14] sm:$0xf] }
  0x15   : > { %v990_v6 = vld [vmem:[%s242_s27 + $0x18] sm:$0xf]  ;;  %v992_v7 = vld [vmem:[%s242_s27 + $0x1c] sm:$0xf]  ;;  %v994_v8 = vld [vmem:[%s242_s27 + $0x20] sm:$0xf] }
  0x16   : > { %v996_v9 = vld [vmem:[%s242_s27 + $0x24] sm:$0xf]  ;;  %v998_v10 = vld [vmem:[%s242_s27 + $0x28] sm:$0xf]  ;;  %v1000_v11 = vld [vmem:[%s242_s27 + $0x2c] sm:$0xf] }
  0x17   : > { %v1002_v12 = vld [vmem:[%s242_s27 + $0x30] sm:$0xf]  ;;  %285 = vst [vmem:[#allocation2 + $0x30] sm:$0xff] (!%p779_p5), %v919_v13  ;;  %286 = vst [vmem:[#allocation2 + $0x38] sm:$0xff] (!%p779_p5), %v919_v13 }
  0x18   : > { %287 = vst [vmem:[#allocation2 + $0x40] sm:$0xff] %v919_v13  ;;  %288 = vst [vmem:[#allocation2 + $0x48] sm:$0xff] %v919_v13 }
  0x19   : > { %289 = vst [vmem:[#allocation2 + $0x50] sm:$0xff] %v919_v13  ;;  %290 = vst [vmem:[#allocation2 + $0x58] sm:$0xff] %v919_v13 }
  0x1a   : > { %291 = vst [vmem:[#allocation2 + $0x60] sm:$0xff] %v919_v13  ;;  %293 = vst.msk [vmem:[#allocation3] sm:$0xff] %vm292_vm0, %v920_v14 }
  0x1b   : > { %294 = vst.msk [vmem:[#allocation3 + $0x8] sm:$0xff] %vm292_vm0, %v920_v14  ;;  %295 = vst.msk [vmem:[#allocation3 + $0x10] sm:$0xff] %vm292_vm0, %v920_v14 }
  0x1c   : > { %296 = vst.msk [vmem:[#allocation3 + $0x18] sm:$0xff] %vm292_vm0, %v920_v14  ;;  %297 = vst.msk [vmem:[#allocation3 + $0x20] sm:$0xff] %vm292_vm0, %v920_v14 }
  0x1d   : > { %298 = vst.msk [vmem:[#allocation3 + $0x28] sm:$0xff] %vm292_vm0, %v920_v14  ;;  %299 = vst.msk [vmem:[#allocation3 + $0x30] sm:$0xff] %vm292_vm0, %v920_v14 }
  0x1e   : > { %300 = vst.msk [vmem:[#allocation3 + $0x38] sm:$0xff] %vm292_vm0, %v920_v14  ;;  %301 = vst.msk [vmem:[#allocation3 + $0x40] sm:$0xff] %vm292_vm0, %v920_v14 }
  0x1f   : > { %302 = vst.msk [vmem:[#allocation3 + $0x48] sm:$0xff] %vm292_vm0, %v920_v14  ;;  %303 = vst.msk [vmem:[#allocation3 + $0x50] sm:$0xff] %vm292_vm0, %v920_v14 }
  0x20   : > { %304 = vst.msk [vmem:[#allocation3 + $0x58] sm:$0xff] %vm292_vm0, %v920_v14  ;;  %305 = vst.msk [vmem:[#allocation3 + $0x60] sm:$0xff] %vm292_vm0, %v920_v14 }
  0x21 PF: > { %v891_v15 = vld [vmem:[%s973_s24] sm:$0xff]   ;;  %v921_v16 = vmov 0.0   ;;  %v533_v17 = vunpack.c.l.bf16 %v978_v0  ;;  %v534_v18 = vunpack.c.l.bf16 %v980_v1  ;;  %v535_v19 = vunpack.c.l.bf16 %v982_v2  ;;  %v892_v20 = vld [vmem:[%s973_s24 + $0x8] sm:$0xff]   ;;  %v893_v27 = vld [vmem:[%s973_s24 + $0x10] sm:$0xff]   ;;  %p798_p6 = scmp.ne.s32.totalorder %s909_s15, 8 }
  0x22   : > { %818 = vmatprep.subr.bf16.mxu0 %v921_v16  ;;  %854 = vmatprep.subr.bf16.mxu1 %v921_v16  ;;  %v536_v21 = vunpack.c.l.bf16 %v984_v3  ;;  %v537_v22 = vunpack.c.l.bf16 %v986_v4  ;;  %v538_v23 = vunpack.c.l.bf16 %v988_v5  ;;  %v539_v24 = vunpack.c.l.bf16 %v990_v6  ;;  %v520_v28 = vld [vmem:[#allocation3] sm:$0xff]  ;;  %v521_v29 = vld [vmem:[#allocation3 + $0x8] sm:$0xff]  ;;  %v522_v30 = vld [vmem:[#allocation3 + $0x10] sm:$0xff] }
  0x23   : > { %819 = vmatpush3.bf16.msra.mxu0 %v891_v15  ;;  %858 = vmatpush3.bf16.msra.mxu1 %v891_v15  ;;  %v540_v25 = vunpack.c.l.bf16 %v992_v7  ;;  %v541_v26 = vunpack.c.l.bf16 %v994_v8  ;;  %vm922_vm1 = vmmov 0   ;;  %v542_v31 = vunpack.c.l.bf16 %v996_v9  ;;  %v523_v34 = vld [vmem:[#allocation3 + $0x18] sm:$0xff]  ;;  %v524_v35 = vld [vmem:[#allocation3 + $0x20] sm:$0xff]  ;;  %v894_v58 = vld [vmem:[%s973_s24 + $0x18] sm:$0xff]  }
  0x24   : > { %820 = vmatprep.subr.bf16.mxu0 %v921_v16  ;;  %855 = vmatprep.subr.bf16.mxu1 %v921_v16  ;;  %v543_v32 = vunpack.c.l.bf16 %v998_v10  ;;  %v544_v33 = vunpack.c.l.bf16 %v1000_v11  ;;  %v525_v36 = vld [vmem:[#allocation3 + $0x28] sm:$0xff]  ;;  %v545_v37 = vunpack.c.l.bf16 %v1002_v12  ;;  %v546_v38 = vmax.f32 %v520_v28, %v533_v17  ;;  %v526_v41 = vld [vmem:[#allocation3 + $0x30] sm:$0xff] }
  0x25   : > { %826 = vmatprep.mubr.msk.bf16.mxu0 %vm922_vm1, %v921_v16  ;;  %842 = vmatprep.mubr.msk.bf16.mxu1 %vm922_vm1, %v921_v16  ;;  %v547_v39 = vmax.f32 %v521_v29, %v534_v18  ;;  %v548_v40 = vmax.f32 %v522_v30, %v535_v19  ;;  %vm384_vm2 = vcmask 523264   ;;  %v527_v42 = vld [vmem:[#allocation3 + $0x38] sm:$0xff]  ;;  %v528_v43 = vld [vmem:[#allocation3 + $0x40] sm:$0xff]  ;;  %v549_v44 = vmax.f32 %v523_v34, %v536_v21  ;;  %v316_v19 = vld [vmem:[#allocation2 + $0x50] sm:$0xff] }
  0x26   : > { %v550_v45 = vmax.f32 %v524_v35, %v537_v22  ;;  %v551_v46 = vmax.f32 %v525_v36, %v538_v23  ;;  %v529_v47 = vld [vmem:[#allocation3 + $0x48] sm:$0xff]  ;;  %v530_v48 = vld [vmem:[#allocation3 + $0x50] sm:$0xff]  ;;  %v552_v50 = vmax.f32 %v526_v41, %v539_v24  ;;  %v553_v51 = vmax.f32 %v527_v42, %v540_v25  ;;  %559 = vst.msk [vmem:[#allocation3] sm:$0xff] %vm384_vm2, %v546_v38  ;;  %v310_v34 = vld [vmem:[#allocation2 + $0x20] sm:$0xff] }
  0x27   : > { %821 = vmatpush3.bf16.msra.mxu0 %v892_v20  ;;  %859 = vmatpush3.bf16.msra.mxu1 %v892_v20  ;;  %v531_v49 = vld [vmem:[#allocation3 + $0x58] sm:$0xff]  ;;  %v554_v52 = vmax.f32 %v528_v43, %v541_v26  ;;  %560 = vst.msk [vmem:[#allocation3 + $0x8] sm:$0xff] %vm384_vm2, %v547_v39  ;;  %561 = vst.msk [vmem:[#allocation3 + $0x10] sm:$0xff] %vm384_vm2, %v548_v40  ;;  %v532_v53 = vld [vmem:[#allocation3 + $0x60] sm:$0xff]  ;;  %v555_v54 = vmax.f32 %v529_v47, %v542_v31 }
  0x28   : > { %822 = vmatprep.subr.bf16.mxu0 %v921_v16  ;;  %856 = vmatprep.subr.bf16.mxu1 %v921_v16  ;;  %v556_v55 = vmax.f32 %v530_v48, %v543_v32  ;;  %v557_v56 = vmax.f32 %v531_v49, %v544_v33  ;;  %562 = vst.msk [vmem:[#allocation3 + $0x18] sm:$0xff] %vm384_vm2, %v549_v44  ;;  %563 = vst.msk [vmem:[#allocation3 + $0x20] sm:$0xff] %vm384_vm2, %v550_v45  ;;  %v309_v21 = vld [vmem:[#allocation2 + $0x18] sm:$0xff]  ;;  %v318_v35 = vld [vmem:[#allocation2 + $0x60] sm:$0xff] }
  0x29   : > { %564 = vst.msk [vmem:[#allocation3 + $0x28] sm:$0xff] %vm384_vm2, %v551_v46  ;;  %v558_v57 = vmax.f32 %v532_v53, %v545_v37  ;;  %565 = vst.msk [vmem:[#allocation3 + $0x30] sm:$0xff] %vm384_vm2, %v552_v50  ;;  %v780_v59 = vcombine.low %v978_v0, %v980_v1  ;;  %v784_v60 = vcombine.low %v994_v8, %v996_v9  ;;  %v307_v9 = vld [vmem:[#allocation2 + $0x8] sm:$0xff]  ;;  %v317_v23 = vld [vmem:[#allocation2 + $0x58] sm:$0xff] }
  0x2a   : > { %566 = vst.msk [vmem:[#allocation3 + $0x38] sm:$0xff] %vm384_vm2, %v553_v51  ;;  %567 = vst.msk [vmem:[#allocation3 + $0x40] sm:$0xff] %vm384_vm2, %v554_v52  ;;  %v781_v61 = vcombine.low %v982_v2, %v984_v3  ;;  %v785_v62 = vcombine.low %v998_v10, %v1000_v11  ;;  %v782_v63 = vcombine.low %v986_v4, %v988_v5  ;;  %v306_v2 = vld [vmem:[#allocation2] sm:$0xff]  ;;  %v315_v5 = vld [vmem:[#allocation2 + $0x48] sm:$0xff] }
  0x2b   : > { %823 = vmatpush3.bf16.msra.mxu0 %v893_v27  ;;  %860 = vmatpush3.bf16.msra.mxu1 %v893_v27  ;;  %568 = vst.msk [vmem:[#allocation3 + $0x48] sm:$0xff] %vm384_vm2, %v555_v54  ;;  %569 = vst.msk [vmem:[#allocation3 + $0x50] sm:$0xff] %vm384_vm2, %v556_v55  ;;  %v786_v0 = vcombine.low %v1002_v12, %v1002_v12  ;;  %v783_v1 = vcombine.low %v990_v6, %v992_v7  ;;  %v314_v3 = vld [vmem:[#allocation2 + $0x40] sm:$0xff]  ;;  %v308_v7 = vld [vmem:[#allocation2 + $0x10] sm:$0xff] }
  0x2c   : > { %570 = vst.msk [vmem:[#allocation3 + $0x58] sm:$0xff] %vm384_vm2, %v557_v56  ;;  %824 = vmatprep.subr.bf16.mxu0 %v921_v16  ;;  %571 = vst.msk [vmem:[#allocation3 + $0x60] sm:$0xff] %vm384_vm2, %v558_v57  ;;  %857 = vmatprep.subr.bf16.mxu1 %v921_v16  ;;  %v311_v37 = vld [vmem:[#allocation2 + $0x28] sm:$0xff]  ;;  %v312_v48 = vld [vmem:[#allocation2 + $0x30] sm:$0xff] }
  0x2d   : > { %v313_v50 = vld [vmem:[#allocation2 + $0x38] sm:$0xff]  ;;  %v799_v57 = vld [vmem:[%s1197_s2] ss:$0 sm:$0xff] (!%p798_p6) }
  0x2f   : > { %825 = vmatpush3.bf16.msra.mxu0 %v894_v58  ;;  %861 = vmatpush3.bf16.msra.mxu1 %v894_v58 }
  0x32   : > { %827 = vmatmul.mubr.msk.bf16.vlgmr.msra.gmra.mrb[0].mxu0 %vm384_vm2, %v780_v59  ;;  %843 = vmatmul.mubr.msk.bf16.vlgmr.msra.gmra.mrb[0].mxu1 %vm384_vm2, %v784_v60 }
  0x33   : > { %830 = vmatprep.mubr.msk.bf16.mxu0 %vm922_vm1, %v921_v16  ;;  %846 = vmatprep.mubr.msk.bf16.mxu1 %vm922_vm1, %v921_v16 }
  0x3a   : > { %831 = vmatmul.mubr.msk.bf16.gmra.mrb[4].mxu0 %vm384_vm2, %v781_v61  ;;  %847 = vmatmul.mubr.msk.bf16.gmra.mrb[4].mxu1 %vm384_vm2, %v785_v62 }
  0x3b   : > { %834 = vmatprep.mubr.msk.bf16.mxu0 %vm922_vm1, %v921_v16  ;;  %850 = vmatprep.mubr.msk.bf16.mxu1 %vm922_vm1, %v921_v16 }
  0x42   : > { %835 = vmatmul.mubr.msk.bf16.gmra.mrb[8].mxu0 %vm384_vm2, %v782_v63  ;;  %851 = vmatmul.mubr.msk.bf16.gmra.mrb[8].mxu1 %vm384_vm2, %v786_v0 }
  0x43   : > { %838 = vmatprep.mubr.msk.bf16.mxu0 %vm922_vm1, %v921_v16 }
  0x4a   : > { %839 = vmatmul.mubr.msk.bf16.gmra.mrb[12].mxu0 %vm384_vm2, %v783_v1 }
 0x105   : > { %v440_v8 = vpop.f32.mrb[0].mxu0  ;;  %v472_v4 = vpop.f32.mrb[0].mxu1 }
 0x106   : > { %v494_v10 = vadd.f32 %v440_v8, %v306_v2  ;;  %v828_v11 = vpop.f32.mrb[1].mxu0  ;;  %v502_v12 = vadd.f32 %v472_v4, %v314_v3  ;;  %v844_v13 = vpop.f32.mrb[1].mxu1 }
 0x107   : > { %v443_v14 = vpop.f32.mrb[2].mxu0  ;;  %v475_v15 = vpop.f32.mrb[2].mxu1 }
 0x108   : > { %507 = vst [vmem:[#allocation2] sm:$0xff] %v494_v10  ;;  %v495_v17 = vadd.f32 %v443_v14, %v307_v9  ;;  %v829_v16 = vpop.f32.mrb[3].mxu0  ;;  %515 = vst [vmem:[#allocation2 + $0x40] sm:$0xff] %v502_v12  ;;  %v503_v18 = vadd.f32 %v475_v15, %v315_v5  ;;  %v845_v6 = vpop.f32.mrb[3].mxu1 }
 0x10a   : > { %508 = vst [vmem:[#allocation2 + $0x8] sm:$0xff] %v495_v17  ;;  %516 = vst [vmem:[#allocation2 + $0x48] sm:$0xff] %v503_v18 }
 0x10d   : > { %v448_v20 = vpop.f32.mrb[4].mxu0  ;;  %v480_v22 = vpop.f32.mrb[4].mxu1 }
 0x10e   : > { %v496_v24 = vadd.f32 %v448_v20, %v308_v7  ;;  %v832_v25 = vpop.f32.mrb[5].mxu0  ;;  %v504_v26 = vadd.f32 %v480_v22, %v316_v19  ;;  %v848_v27 = vpop.f32.mrb[5].mxu1  ;;  %v635_v19 = vld [vmem:[#allocation3] sm:$0xff] (!%p798_p6) }
 0x10f   : > { %v451_v28 = vpop.f32.mrb[6].mxu0  ;;  %v483_v29 = vpop.f32.mrb[6].mxu1  ;;  %v576_v56 = vld [vmem:[#allocation2] sm:$0xff] (!%p798_p6)  ;;  %648 = vst.msk [vmem:[%s1198_s3] sm:$0xff] (!%p798_p6), %vm384_vm2, %v635_v19  ;;  %v637_v25 = vld [vmem:[#allocation3 + $0x10] sm:$0xff] (!%p798_p6) }
 0x110   : > { %509 = vst [vmem:[#allocation2 + $0x10] sm:$0xff] %v496_v24  ;;  %v497_v30 = vadd.f32 %v451_v28, %v309_v21  ;;  %v833_v31 = vpop.f32.mrb[7].mxu0  ;;  %517 = vst [vmem:[#allocation2 + $0x50] sm:$0xff] %v504_v26  ;;  %v505_v32 = vadd.f32 %v483_v29, %v317_v23  ;;  %v849_v33 = vpop.f32.mrb[7].mxu1  ;;  %v596_v59 = vadd.f32 (!%p798_p6), %v799_v57, %v576_v56  ;;  %v584_v12 = vld [vmem:[#allocation2 + $0x40] sm:$0xff] (!%p798_p6)  ;;  %v636_v24 = vld [vmem:[#allocation3 + $0x8] sm:$0xff] (!%p798_p6) }
 0x111   : > { %v577_v58 = vld [vmem:[#allocation2 + $0x8] sm:$0xff] (!%p798_p6)  ;;  %v604_v22 = vadd.f32 (!%p798_p6), %v799_v57, %v584_v12  ;;  %v638_v26 = vld [vmem:[#allocation3 + $0x18] sm:$0xff] (!%p798_p6)  ;;  %649 = vst.msk [vmem:[%s1198_s3 + $0x8] sm:$0xff] (!%p798_p6), %vm384_vm2, %v636_v24  ;;  %650 = vst.msk [vmem:[%s1198_s3 + $0x10] sm:$0xff] (!%p798_p6), %vm384_vm2, %v637_v25 }
 0x112   : > { %510 = vst [vmem:[#allocation2 + $0x18] sm:$0xff] %v497_v30  ;;  %518 = vst [vmem:[#allocation2 + $0x58] sm:$0xff] %v505_v32  ;;  %v597_v60 = vadd.f32 (!%p798_p6), %v799_v57, %v577_v58  ;;  %v609_v4 = vmax.f32 (!%p798_p6), %v596_v59, 0.0  ;;  %v585_v13 = vld [vmem:[#allocation2 + $0x48] sm:$0xff] (!%p798_p6)  ;;  %v640_v32 = vld [vmem:[#allocation3 + $0x28] sm:$0xff] (!%p798_p6) }
 0x113   : > { %v605_v23 = vadd.f32 (!%p798_p6), %v799_v57, %v585_v13  ;;  %651 = vst.msk [vmem:[%s1198_s3 + $0x18] sm:$0xff] (!%p798_p6), %vm384_vm2, %v638_v26  ;;  %v639_v31 = vld [vmem:[#allocation3 + $0x20] sm:$0xff] (!%p798_p6)  ;;  %v641_v33 = vld [vmem:[#allocation3 + $0x30] sm:$0xff] (!%p798_p6)  ;;  %653 = vst.msk [vmem:[%s1198_s3 + $0x28] sm:$0xff] (!%p798_p6), %vm384_vm2, %v640_v32 }
 0x114   : > { %v610_v5 = vmax.f32 (!%p798_p6), %v597_v60, 0.0  ;;  %622 = vst [vmem:[%s1199_s4] sm:$0xff] (!%p798_p6), %v609_v4  ;;  %652 = vst.msk [vmem:[%s1198_s3 + $0x20] sm:$0xff] (!%p798_p6), %vm384_vm2, %v639_v31 }
 0x115   : > { %v456_v36 = vpop.f32.mrb[8].mxu0  ;;  %v488_v38 = vpop.f32.mrb[8].mxu1  ;;  %654 = vst.msk [vmem:[%s1198_s3 + $0x30] sm:$0xff] (!%p798_p6), %vm384_vm2, %v641_v33 }
 0x116   : > { %v498_v39 = vadd.f32 %v456_v36, %v310_v34  ;;  %v836_v40 = vpop.f32.mrb[9].mxu0  ;;  %v506_v41 = vadd.f32 %v488_v38, %v318_v35  ;;  %v852_v42 = vpop.f32.mrb[9].mxu1  ;;  %623 = vst [vmem:[%s1199_s4 + $0x8] sm:$0xff] (!%p798_p6), %v610_v5  ;;  %v617_v34 = vmax.f32 (!%p798_p6), %v604_v22, 0.0  ;;  %v618_v35 = vmax.f32 (!%p798_p6), %v605_v23, 0.0  ;;  %v642_v36 = vld [vmem:[#allocation3 + $0x38] sm:$0xff] (!%p798_p6) }
 0x117   : > { %v459_v43 = vpop.f32.mrb[10].mxu0  ;;  %v491_v44 = vpop.f32.mrb[10].mxu1  ;;  %v578_v61 = vld [vmem:[#allocation2 + $0x10] sm:$0xff] (!%p798_p6)  ;;  %655 = vst.msk [vmem:[%s1198_s3 + $0x38] sm:$0xff] (!%p798_p6), %vm384_vm2, %v642_v36  ;;  %v645_v42 = vld [vmem:[#allocation3 + $0x50] sm:$0xff] (!%p798_p6) }
 0x118   : > { %511 = vst [vmem:[#allocation2 + $0x20] sm:$0xff] %v498_v39  ;;  %v499_v45 = vadd.f32 %v459_v43, %v311_v37  ;;  %v837_v46 = vpop.f32.mrb[11].mxu0  ;;  %519 = vst [vmem:[#allocation2 + $0x60] sm:$0xff] %v506_v41  ;;  %v853_v47 = vpop.f32.mrb[11].mxu1  ;;  %v598_v0 = vadd.f32 (!%p798_p6), %v799_v57, %v578_v61  ;;  %v586_v14 = vld [vmem:[#allocation2 + $0x50] sm:$0xff] (!%p798_p6)  ;;  %v643_v37 = vld [vmem:[#allocation3 + $0x40] sm:$0xff] (!%p798_p6) }
 0x119   : > { %v579_v62 = vld [vmem:[#allocation2 + $0x18] sm:$0xff] (!%p798_p6)  ;;  %v606_v28 = vadd.f32 (!%p798_p6), %v799_v57, %v586_v14  ;;  %v644_v38 = vld [vmem:[#allocation3 + $0x48] sm:$0xff] (!%p798_p6)  ;;  %656 = vst.msk [vmem:[%s1198_s3 + $0x40] sm:$0xff] (!%p798_p6), %vm384_vm2, %v643_v37  ;;  %v646_v43 = vld [vmem:[#allocation3 + $0x58] sm:$0xff] (!%p798_p6) }
 0x11a   : > { %512 = vst [vmem:[#allocation2 + $0x28] sm:$0xff] %v499_v45  ;;  %v599_v1 = vadd.f32 (!%p798_p6), %v799_v57, %v579_v62  ;;  %v611_v15 = vmax.f32 (!%p798_p6), %v598_v0, 0.0  ;;  %v587_v6 = vld [vmem:[#allocation2 + $0x58] sm:$0xff] (!%p798_p6)  ;;  %657 = vst.msk [vmem:[%s1198_s3 + $0x48] sm:$0xff] (!%p798_p6), %vm384_vm2, %v644_v38  ;;  %v647_v44 = vld [vmem:[#allocation3 + $0x60] sm:$0xff] (!%p798_p6) }
 0x11b   : > { %v607_v29 = vadd.f32 (!%p798_p6), %v799_v57, %v587_v6  ;;  %v619_v39 = vmax.f32 (!%p798_p6), %v606_v28, 0.0  ;;  %630 = vst [vmem:[%s1199_s4 + $0x40] sm:$0xff] (!%p798_p6), %v617_v34  ;;  %631 = vst [vmem:[%s1199_s4 + $0x48] sm:$0xff] (!%p798_p6), %v618_v35 }
 0x11c   : > { %575 = sbr.rel (%p798_p6) target bundleno = 303 (0x12f), region = 40  ;;  %v612_v17 = vmax.f32 (!%p798_p6), %v599_v1, 0.0  ;;  %624 = vst [vmem:[%s1199_s4 + $0x10] sm:$0xff] (!%p798_p6), %v611_v15  ;;  %658 = vst.msk [vmem:[%s1198_s3 + $0x50] sm:$0xff] (!%p798_p6), %vm384_vm2, %v645_v42 }
 0x11d   : > { %v464_v49 = vpop.f32.mrb[12].mxu0  ;;  %v620_v40 = vmax.f32 (!%p798_p6), %v607_v29, 0.0  ;;  %659 = vst.msk [vmem:[%s1198_s3 + $0x58] sm:$0xff] (!%p798_p6), %vm384_vm2, %v646_v43  ;;  %660 = vst.msk [vmem:[%s1198_s3 + $0x60] sm:$0xff] (!%p798_p6), %vm384_vm2, %v647_v44 }
 0x11e   : > { %v500_v51 = vadd.f32 %v464_v49, %v312_v48  ;;  %v840_v52 = vpop.f32.mrb[13].mxu0  ;;  %625 = vst [vmem:[%s1199_s4 + $0x18] sm:$0xff] (!%p798_p6), %v612_v17  ;;  %632 = vst [vmem:[%s1199_s4 + $0x50] sm:$0xff] (!%p798_p6), %v619_v39 }
 0x11f   : > { %v467_v53 = vpop.f32.mrb[14].mxu0  ;;  %v580_v63 = vld [vmem:[#allocation2 + $0x20] sm:$0xff] (!%p798_p6)  ;;  %633 = vst [vmem:[%s1199_s4 + $0x58] sm:$0xff] (!%p798_p6), %v620_v40 }
 0x120   : > { %513 = vst [vmem:[#allocation2 + $0x30] sm:$0xff] %v500_v51  ;;  %v501_v54 = vadd.f32 %v467_v53, %v313_v50  ;;  %v841_v55 = vpop.f32.mrb[15].mxu0  ;;  %v600_v2 = vadd.f32 (!%p798_p6), %v799_v57, %v580_v63  ;;  %v588_v7 = vld [vmem:[#allocation2 + $0x60] sm:$0xff] (!%p798_p6) }
 0x121   : > { %v581_v3 = vld [vmem:[#allocation2 + $0x28] sm:$0xff] (!%p798_p6)  ;;  %v608_v30 = vadd.f32 (!%p798_p6), %v799_v57, %v588_v7 }
 0x122   : > { %514 = vst [vmem:[#allocation2 + $0x38] sm:$0xff] %v501_v54  ;;  %v601_v10 = vadd.f32 (!%p798_p6), %v799_v57, %v581_v3  ;;  %v613_v16 = vmax.f32 (!%p798_p6), %v600_v2, 0.0 }
 0x123   : > { %v621_v41 = vmax.f32 %v608_v30, 0.0 }
 0x124   : > { %v614_v20 = vmax.f32 %v601_v10, 0.0  ;;  %626 = vst [vmem:[%s1199_s4 + $0x20] sm:$0xff] %v613_v16 }
 0x125   : > { %634 = vst [vmem:[%s1199_s4 + $0x60] sm:$0xff] %v621_v41 }
 0x126   : > { %627 = vst [vmem:[%s1199_s4 + $0x28] sm:$0xff] %v614_v20 }
 0x127   : > { %v582_v8 = vld [vmem:[#allocation2 + $0x30] sm:$0xff] }
 0x128   : > { %v602_v11 = vadd.f32 %v799_v57, %v582_v8 }
 0x129   : > { %v583_v9 = vld [vmem:[#allocation2 + $0x38] sm:$0xff] }
 0x12a   : > { %v603_v18 = vadd.f32 %v799_v57, %v583_v9  ;;  %v615_v21 = vmax.f32 %v602_v11, 0.0 }
 0x12c   : > { %v616_v27 = vmax.f32 %v603_v18, 0.0  ;;  %628 = vst [vmem:[%s1199_s4 + $0x30] sm:$0xff] %v615_v21 }
 0x12e   : > { %629 = vst [vmem:[%s1199_s4 + $0x38] sm:$0xff] %v616_v27 }
 0x12f PF: > { %s15_s17 = sadd.s32 1, %s917_s17   ;;  %s1200_s15 = smov %s913_s16 }
 0x130   : > { %p12_p7 = scmp.ge.s32.totalorder %s15_s17, 11   ;;  %s1201_s16 = smov %s1203_s18 }
 0x132   :  { %14 = sbr.rel (!%p12_p7) target bundleno = 2 (0x2), region = 85 }

</bundles_post_ra>
